<compile_context>
chip_gen: v7x
topology: tpu7x:2x2x1
jax: 0.10.0
libtpu: 0.0.40
codegen_flags: <defaults>
</compile_context>

<pallas_src>
import jax
import jax.numpy as jnp
from jax.experimental import pallas as pl
from jax.experimental.pallas import tpu as pltpu


def _round_up(x: int, m: int) -> int:
    return ((x + m - 1) // m) * m


# ---------------------------------------------------------------------------
# Pallas kernel: fully fused head
#   v   = pooled_cat @ W_proj + b_proj          (fused vectorizer projections)
#   h   = ReLU(v) @ W1 + b1                     (single K=ndim MXU dot)
#   out = ReLU(h) @ W2 + b2                     (VPU+XLU reduction when n_out==1)
# ---------------------------------------------------------------------------
def _make_head_kernel(single_logit: bool):
    def kernel(x_ref, wp_ref, bp_ref, w1_ref, b1_ref, w2_ref, b2_ref, out_ref):
        # Fused vectorizer projections: block-diagonal weight produces the
        # already-concatenated (TB, ndim) feature vector with one dot.
        v = (jnp.dot(x_ref[...], wp_ref[...], preferred_element_type=jnp.float32)
             + bp_ref[...])
        # Sequential(ReLU, Linear(ndim, ndim), ReLU, Linear(ndim, n_out))
        h = jnp.maximum(v, 0.0)
        h = (jnp.dot(h, w1_ref[...], preferred_element_type=jnp.float32)
             + b1_ref[...])
        h = jnp.maximum(h, 0.0)
        if single_logit:
            # n_out == 1: VPU multiply + lane reduction instead of an N=1 MXU
            # matmul; broadcast into a lane-dense padded block (unmasked store).
            s = jnp.sum(h * w2_ref[...], axis=-1, keepdims=True)        # (TB, 1)
            out_ref[...] = s + b2_ref[...]                              # (TB, 128)
        else:
            # multi-class: lane-padded matmul (N padded to a multiple of 128)
            out_ref[...] = (jnp.dot(h, w2_ref[...],
                                    preferred_element_type=jnp.float32)
                            + b2_ref[...])
    return kernel


def bokete_head(pooled_img, pooled_seq,
                w_img, b_img, w_seq, b_seq, w1, b1, w2, b2):
    """Fused Pallas head: vectorizer projections + concat + ReLU/Linear/ReLU/Linear."""
    B, c_img = pooled_img.shape
    _, c_seq = pooled_seq.shape
    d_img = w_img.shape[1]
    d_seq = w_seq.shape[1]
    ndim = d_img + d_seq
    n_out = w2.shape[1]
    assert w1.shape == (ndim, ndim) and w2.shape == (ndim, n_out)

    # --- one-time parameter preprocessing (plain JAX, outside the kernel) ---
    # Fold the two tiny projections into a single block-diagonal (Kin, ndim)
    # weight so  concat([a@Wa+ba, b@Wb+bb]) == concat([a, b]) @ Wblk + bcat.
    kin = c_img + c_seq
    w_proj = jnp.zeros((kin, ndim), jnp.float32)
    w_proj = w_proj.at[:c_img, :d_img].set(w_img.astype(jnp.float32))
    w_proj = w_proj.at[c_img:, d_img:].set(w_seq.astype(jnp.float32))
    b_proj = jnp.concatenate([b_img, b_seq]).astype(jnp.float32).reshape(1, ndim)
    b1_2d = b1.astype(jnp.float32).reshape(1, ndim)

    # Lane-dense padded output (turns masked vst.msk into unmasked vst).
    n_pad = _round_up(max(n_out, 1), 128)
    b2_pad = jnp.zeros((1, n_pad), jnp.float32).at[0, :n_out].set(b2.astype(jnp.float32))

    single_logit = (n_out == 1)
    if single_logit:
        w2_arg = w2.astype(jnp.float32).reshape(1, ndim)        # single column as a row
    else:
        w2_arg = jnp.zeros((ndim, n_pad), jnp.float32).at[:, :n_out].set(
            w2.astype(jnp.float32))

    # --- batch tiling: TB multiple of 8 (128 when B is large enough) --------
    tb = min(128, _round_up(B, 8))
    b_pad = _round_up(B, tb)
    x = jnp.concatenate([pooled_img, pooled_seq], axis=1).astype(jnp.float32)  # (B, Kin)
    if b_pad != B:
        x = jnp.pad(x, ((0, b_pad - B), (0, 0)))
    grid = (b_pad // tb,)

    def row_spec(shape):
        return pl.BlockSpec(shape, lambda i: (i, 0))

    def full_spec(shape):
        return pl.BlockSpec(shape, lambda i: (0, 0))

    out = pl.pallas_call(
        _make_head_kernel(single_logit),
        out_shape=jax.ShapeDtypeStruct((b_pad, n_pad), jnp.float32),
        grid=grid,
        in_specs=[
            row_spec((tb, kin)),          # pooled, concatenated activations
            full_spec((kin, ndim)),       # block-diagonal projection weight
            full_spec((1, ndim)),         # projection bias (concat of b_img, b_seq)
            full_spec((ndim, ndim)),      # Linear1 weight
            full_spec((1, ndim)),         # Linear1 bias
            full_spec(w2_arg.shape),      # Linear2 weight (row for n_out==1)
            full_spec((1, n_pad)),        # Linear2 bias, lane-padded
        ],
        out_specs=row_spec((tb, n_pad)),
        compiler_params=pltpu.CompilerParams(
            dimension_semantics=("parallel",)),   # megacore-sharded batch axis (v7x)
    )(x, w_proj, b_proj, w1.astype(jnp.float32), b1_2d, w2_arg, b2_pad)

    return out[:B, :n_out]


# ---------------------------------------------------------------------------
# Deterministic stand-in vectorizer "backbones" (plain JAX glue).
# Their final linear projections are fused into the Pallas kernel above.
# ---------------------------------------------------------------------------
def image_pool(x_nchw):
    # TODO(synk): real image_vectorizer is a pretrained CNN backbone; stand-in
    # = global average pool over H, W (its linear projection is fused in-kernel).
    return jnp.mean(x_nchw, axis=(2, 3))            # (B, C)


def sequence_pool(tokens, emb_table):
    # TODO(synk): real sequence_vectorizer is a pretrained transformer; stand-in
    # = embedding lookup + mean pool (its linear projection is fused in-kernel).
    return jnp.mean(emb_table[tokens], axis=1)      # (B, E)


def bokete_classifier_forward(image_tensor, tokenized, params):
    pooled_img = image_pool(image_tensor)
    pooled_seq = sequence_pool(tokenized, params["emb"])
    assert pooled_img.shape[0] == pooled_seq.shape[0]
    return bokete_head(pooled_img, pooled_seq,
                       params["w_img"], params["b_img"],
                       params["w_seq"], params["b_seq"],
                       params["w1"], params["b1"],
                       params["w2"], params["b2"])


if __name__ == "__main__":
    # Small shapes consistent with the module's forward
    B, C, H, W = 2, 4, 16, 16          # image NCHW
    S, VOCAB, E = 8, 64, 16            # tokenized (B, S)
    D_IMG, D_SEQ = 32, 32
    NDIM = D_IMG + D_SEQ
    N_CLASSES = 2
    N_OUT = 1 if N_CLASSES == 2 else N_CLASSES

    key = jax.random.PRNGKey(0)
    ks = jax.random.split(key, 10)

    params = {
        # stand-in vectorizer params
        "w_img": jax.random.normal(ks[0], (C, D_IMG), jnp.float32) * 0.1,
        "b_img": jax.random.normal(ks[1], (D_IMG,), jnp.float32) * 0.1,
        "emb":   jax.random.normal(ks[2], (VOCAB, E), jnp.float32) * 0.1,
        "w_seq": jax.random.normal(ks[3], (E, D_SEQ), jnp.float32) * 0.1,
        "b_seq": jax.random.normal(ks[4], (D_SEQ,), jnp.float32) * 0.1,
        # head params: Linear(ndim, ndim), Linear(ndim, n_out)  (stored as (in, out))
        "w1":    jax.random.normal(ks[5], (NDIM, NDIM), jnp.float32) * 0.1,
        "b1":    jax.random.normal(ks[6], (NDIM,), jnp.float32) * 0.1,
        "w2":    jax.random.normal(ks[7], (NDIM, N_OUT), jnp.float32) * 0.1,
        "b2":    jax.random.normal(ks[8], (N_OUT,), jnp.float32) * 0.1,
    }

    image_tensor = jax.random.normal(ks[9], (B, C, H, W), jnp.float32)
    tokenized = jax.random.randint(jax.random.PRNGKey(1), (B, S), 0, VOCAB, jnp.int32)

    out = bokete_classifier_forward(image_tensor, tokenized, params)
    out = jax.block_until_ready(out)
    assert out.shape == (B, N_OUT) and out.dtype == jnp.float32

    # reference check of the full fused path in plain JAX
    pooled_img = image_pool(image_tensor)
    pooled_seq = sequence_pool(tokenized, params["emb"])
    img_vec = pooled_img @ params["w_img"] + params["b_img"]
    seq_vec = pooled_seq @ params["w_seq"] + params["b_seq"]
    v = jnp.maximum(jnp.concatenate([img_vec, seq_vec], axis=1), 0.0)
    h = jnp.maximum(v @ params["w1"] + params["b1"], 0.0)
    ref = h @ params["w2"] + params["b2"]
    assert jnp.allclose(out, ref, atol=1e-5, rtol=1e-5)

    print("KERNEL_OK")
</pallas_src>

<mosaic_0001>
module attributes {stable_mosaic.version = 11 : i64} {
  func.func @kernel(%arg0: i32, %arg1: memref<8x20xf32, #tpu.memory_space<vmem>>, %arg2: memref<20x64xf32, #tpu.memory_space<vmem>>, %arg3: memref<1x64xf32, #tpu.memory_space<vmem>>, %arg4: memref<64x64xf32, #tpu.memory_space<vmem>>, %arg5: memref<1x64xf32, #tpu.memory_space<vmem>>, %arg6: memref<1x64xf32, #tpu.memory_space<vmem>>, %arg7: memref<1x128xf32, #tpu.memory_space<vmem>>, %arg8: memref<8x128xf32, #tpu.memory_space<vmem>>) attributes {dimension_semantics = [#tpu.dimension_semantics<parallel>], iteration_bounds = array<i64: 1>, scalar_prefetch = 0 : i64, scratch_operands = 0 : i64, tpu.core_type = #tpu.core_type<tc>, window_params = [{transform_indices = @transform_0, window_bounds = array<i64: 8, 20>}, {pipeline_mode = #tpu.pipeline_mode<synchronous>, transform_indices = @transform_1, window_bounds = array<i64: 20, 64>}, {pipeline_mode = #tpu.pipeline_mode<synchronous>, transform_indices = @transform_2, window_bounds = array<i64: 1, 64>}, {pipeline_mode = #tpu.pipeline_mode<synchronous>, transform_indices = @transform_3, window_bounds = array<i64: 64, 64>}, {pipeline_mode = #tpu.pipeline_mode<synchronous>, transform_indices = @transform_4, window_bounds = array<i64: 1, 64>}, {pipeline_mode = #tpu.pipeline_mode<synchronous>, transform_indices = @transform_5, window_bounds = array<i64: 1, 64>}, {pipeline_mode = #tpu.pipeline_mode<synchronous>, transform_indices = @transform_6, window_bounds = array<i64: 1, 128>}, {transform_indices = @transform_7, window_bounds = array<i64: 8, 128>}]} {
    %c0 = arith.constant 0 : index
    %c0_0 = arith.constant 0 : index
    %0 = vector.load %arg1[%c0, %c0_0] : memref<8x20xf32, #tpu.memory_space<vmem>>, vector<8x20xf32>
    %c0_1 = arith.constant 0 : index
    %c0_2 = arith.constant 0 : index
    %1 = vector.load %arg2[%c0_1, %c0_2] : memref<20x64xf32, #tpu.memory_space<vmem>>, vector<20x64xf32>
    %cst = arith.constant dense<0.000000e+00> : vector<8x64xf32>
    %2 = tpu.matmul %0, %1, %cst {dimension_numbers = #tpu.dot_dimension_numbers<[1], [0], [0], [1], [0, 0, 1, 1], [], []>} : vector<8x20xf32>, vector<20x64xf32>, vector<8x64xf32> -> vector<8x64xf32>
    %c0_3 = arith.constant 0 : index
    %c0_4 = arith.constant 0 : index
    %3 = vector.load %arg3[%c0_3, %c0_4] : memref<1x64xf32, #tpu.memory_space<vmem>>, vector<1x64xf32>
    %4 = vector.broadcast %3 : vector<1x64xf32> to vector<8x64xf32>
    %5 = arith.addf %2, %4 : vector<8x64xf32>
    %cst_5 = arith.constant 0.000000e+00 : f32
    %6 = vector.broadcast %cst_5 : f32 to vector<8x64xf32>
    %7 = arith.maximumf %5, %6 : vector<8x64xf32>
    %c0_6 = arith.constant 0 : index
    %c0_7 = arith.constant 0 : index
    %8 = vector.load %arg4[%c0_6, %c0_7] : memref<64x64xf32, #tpu.memory_space<vmem>>, vector<64x64xf32>
    %cst_8 = arith.constant dense<0.000000e+00> : vector<8x64xf32>
    %9 = tpu.matmul %7, %8, %cst_8 {dimension_numbers = #tpu.dot_dimension_numbers<[1], [0], [0], [1], [0, 0, 1, 1], [], []>} : vector<8x64xf32>, vector<64x64xf32>, vector<8x64xf32> -> vector<8x64xf32>
    %c0_9 = arith.constant 0 : index
    %c0_10 = arith.constant 0 : index
    %10 = vector.load %arg5[%c0_9, %c0_10] : memref<1x64xf32, #tpu.memory_space<vmem>>, vector<1x64xf32>
    %11 = vector.broadcast %10 : vector<1x64xf32> to vector<8x64xf32>
    %12 = arith.addf %9, %11 : vector<8x64xf32>
    %cst_11 = arith.constant 0.000000e+00 : f32
    %13 = vector.broadcast %cst_11 : f32 to vector<8x64xf32>
    %14 = arith.maximumf %12, %13 : vector<8x64xf32>
    %c0_12 = arith.constant 0 : index
    %c0_13 = arith.constant 0 : index
    %15 = vector.load %arg6[%c0_12, %c0_13] : memref<1x64xf32, #tpu.memory_space<vmem>>, vector<1x64xf32>
    %16 = vector.broadcast %15 : vector<1x64xf32> to vector<8x64xf32>
    %17 = arith.mulf %14, %16 : vector<8x64xf32>
    %cst_14 = arith.constant dense<0.000000e+00> : vector<8xf32>
    %18 = vector.multi_reduction <add>, %17, %cst_14 [1] : vector<8x64xf32> to vector<8xf32>
    %19 = vector.shape_cast %18 : vector<8xf32> to vector<8x1xf32>
    %c0_15 = arith.constant 0 : index
    %c0_16 = arith.constant 0 : index
    %20 = vector.load %arg7[%c0_15, %c0_16] : memref<1x128xf32, #tpu.memory_space<vmem>>, vector<1x128xf32>
    %21 = vector.broadcast %19 : vector<8x1xf32> to vector<8x128xf32>
    %22 = vector.broadcast %20 : vector<1x128xf32> to vector<8x128xf32>
    %23 = arith.addf %21, %22 : vector<8x128xf32>
    %c0_17 = arith.constant 0 : index
    %c0_18 = arith.constant 0 : index
    %24 = vector.load %arg8[%c0_17, %c0_18] : memref<8x128xf32, #tpu.memory_space<vmem>>, vector<8x128xf32>
    tpu.vector_store %arg8[%c0_17, %c0_18], %23 {strides = array<i32>} : memref<8x128xf32, #tpu.memory_space<vmem>>, vector<8x128xf32>,
    return
  }
  func.func @transform_0(%arg0: i32) -> (i32, i32) {
    %c0_i32 = arith.constant 0 : i32
    %c0_i32_0 = arith.constant 0 : i32
    return %arg0, %c0_i32 : i32, i32
  }
  func.func @transform_1(%arg0: i32) -> (i32, i32) {
    %c0_i32 = arith.constant 0 : i32
    %c0_i32_0 = arith.constant 0 : i32
    %c0_i32_1 = arith.constant 0 : i32
    return %c0_i32, %c0_i32_0 : i32, i32
  }
  func.func @transform_2(%arg0: i32) -> (i32, i32) {
    %c0_i32 = arith.constant 0 : i32
    %c0_i32_0 = arith.constant 0 : i32
    %c0_i32_1 = arith.constant 0 : i32
    return %c0_i32, %c0_i32_0 : i32, i32
  }
  func.func @transform_3(%arg0: i32) -> (i32, i32) {
    %c0_i32 = arith.constant 0 : i32
    %c0_i32_0 = arith.constant 0 : i32
    %c0_i32_1 = arith.constant 0 : i32
    return %c0_i32, %c0_i32_0 : i32, i32
  }
  func.func @transform_4(%arg0: i32) -> (i32, i32) {
    %c0_i32 = arith.constant 0 : i32
    %c0_i32_0 = arith.constant 0 : i32
    %c0_i32_1 = arith.constant 0 : i32
    return %c0_i32, %c0_i32_0 : i32, i32
  }
  func.func @transform_5(%arg0: i32) -> (i32, i32) {
    %c0_i32 = arith.constant 0 : i32
    %c0_i32_0 = arith.constant 0 : i32
    %c0_i32_1 = arith.constant 0 : i32
    return %c0_i32, %c0_i32_0 : i32, i32
  }
  func.func @transform_6(%arg0: i32) -> (i32, i32) {
    %c0_i32 = arith.constant 0 : i32
    %c0_i32_0 = arith.constant 0 : i32
    %c0_i32_1 = arith.constant 0 : i32
    return %c0_i32, %c0_i32_0 : i32, i32
  }
  func.func @transform_7(%arg0: i32) -> (i32, i32) {
    %c0_i32 = arith.constant 0 : i32
    %c0_i32_0 = arith.constant 0 : i32
    return %arg0, %c0_i32 : i32, i32
  }
}

</mosaic_0001>

<bundles_post_ra>
// kernel: tpu_custom_call.1
= control target key start
LH: loop header
LB: loop body
LE: loop exit
PB: predicated region body
PF: predicated region fallthrough
CT: control target
= control target key end

     0   :  { %12 = vsyncpa [#allocation3], 0  ;;  %s563_s0 = inlined_call_operand.hbm [shape: f32[8,20], index: 0, kind: input, shape index: {}]   ;;  %s564_s1 = inlined_call_operand.hbm [shape: f32[20,64], index: 1, kind: input, shape index: {}]   ;;  %s565_s2 = inlined_call_operand.vmem [shape: f32[1,64], index: 2, kind: input, shape index: {}]   ;;  %s566_s3 = inlined_call_operand.hbm [shape: f32[64,64], index: 3, kind: input, shape index: {}]   ;;  %s567_s4 = inlined_call_operand.vmem [shape: f32[1,64], index: 4, kind: input, shape index: {}]   ;;  %s568_s5 = inlined_call_operand.vmem [shape: f32[1,64], index: 5, kind: input, shape index: {}]   ;;  %s569_s6 = inlined_call_operand.vmem [shape: f32[1,128], index: 6, kind: input, shape index: {}]   ;;  %s570_s7 = inlined_call_operand.hbm [shape: f32[8,128], index: 7, kind: output, shape index: {}]  }
   0x1   :  { %13 = vsyncpa [#allocation6], 0 }
   0x2   :  { %14 = vsyncpa [#allocation4], 0  ;;  %s448_s24 = smov [#allocation5]   ;;  %s354_s28 = scalar_lea.hbm %s564_s1, 384 }
   0x3   :  { %s30_s25 = sshll.u32 %s448_s24, 4  ;;  %p355_p0 = scmp.ne.s32.totalorder %s564_s1, %s354_s28  ;;  %s31_s25 = int_to_ptr.vmem [resolvable:$true] %s30_s25 }
   0x4   :  { %p358_p1 = scmp.lt.u32.totalorder %s354_s28, %s564_s1 }
   0x6   :  { %p360_p2 = pnand %p358_p1, %p355_p0 }
   0x8   :  { %363 = shalt.err (!%p360_p2)
}
   0x9   :  { %s364_s10 = scalar_lea.vmem %s31_s25, 384  ;;  %p369_p4 = scmp.lt.s32.totalorder %s31_s25, %s31_s25 }
   0xa   :  { %p365_p3 = scmp.ne.s32.totalorder %s31_s25, %s364_s10  ;;  %p370_p5 = scmp.lt.s32.totalorder %s364_s10, %s364_s10 }
   0xc   :  { %p371_p6 = por %p370_p5, %p369_p4 }
   0xe   :  { %p372_p7 = pnand %p371_p6, %p365_p3 }
  0x10   :  { %375 = shalt.err (!%p372_p7)
}
  0x11   :  { %s449_s11 = smov 128   ;;  %s450_s12 = smov 8  }
  0x12   :  { %36 = dma.hbm_to_vmem [thread:$0]  %s564_s1, 384, %s31_s25, [#allocation6], %s449_s11, %s449_s11, %s450_s12  }
  0x13   :  { %s451_s15 = smov [#allocation2]   ;;  %s452_s17 = smov [#allocation7]  }
  0x14   :  { %s21_s16 = sshll.u32 %s451_s15, 4  ;;  %s44_s18 = sshll.u32 %s452_s17, 4  ;;  %s22_s16 = int_to_ptr.vmem [resolvable:$true] %s21_s16  ;;  %s45_s18 = int_to_ptr.vmem [resolvable:$true] %s44_s18 }
  0x15   :  { %s376_s21 = scalar_lea.hbm %s563_s0, 128 }
  0x16   :  { %p377_p8 = scmp.ne.s32.totalorder %s563_s0, %s376_s21  ;;  %p380_p9 = scmp.lt.u32.totalorder %s376_s21, %s563_s0 }
  0x18   :  { %p382_p10 = pnand %p380_p9, %p377_p8 }
  0x1a   :  { %385 = shalt.err (!%p382_p10)
}
  0x1b   :  { %s386_s1 = scalar_lea.vmem %s22_s16, 128  ;;  %p391_p12 = scmp.lt.s32.totalorder %s22_s16, %s22_s16 }
  0x1c   :  { %p387_p11 = scmp.ne.s32.totalorder %s22_s16, %s386_s1  ;;  %p392_p13 = scmp.lt.s32.totalorder %s386_s1, %s386_s1 }
  0x1e   :  { %p393_p0 = por %p392_p13, %p391_p12 }
  0x20   :  { %p394_p1 = pnand %p393_p0, %p387_p11 }
  0x22   :  { %397 = shalt.err (!%p394_p1)
}
  0x23   :  { %24 = dma.hbm_to_vmem [thread:$0]  %s563_s0, 128, %s22_s16, [#allocation3]  }
  0x24   :  { %s398_s30 = scalar_lea.hbm %s566_s3, 1024 }
  0x25   :  { %p399_p2 = scmp.ne.s32.totalorder %s566_s3, %s398_s30  ;;  %p402_p3 = scmp.lt.u32.totalorder %s398_s30, %s566_s3 }
  0x27   :  { %p404_p4 = pnand %p402_p3, %p399_p2 }
  0x29   :  { %407 = shalt.err (!%p404_p4)
}
  0x2a   :  { %s408_s14 = scalar_lea.vmem %s45_s18, 1024  ;;  %p413_p6 = scmp.lt.s32.totalorder %s45_s18, %s45_s18 }
  0x2b   :  { %p409_p5 = scmp.ne.s32.totalorder %s45_s18, %s408_s14  ;;  %p414_p7 = scmp.lt.s32.totalorder %s408_s14, %s408_s14 }
  0x2d   :  { %p415_p8 = por %p414_p7, %p413_p6 }
  0x2f   :  { %p416_p9 = pnand %p415_p8, %p409_p5 }
  0x31   :  { %419 = shalt.err (!%p416_p9)
}
  0x32   :  { %50 = dma.hbm_to_vmem [thread:$0]  %s566_s3, 1024, %s45_s18, [#allocation6], %s449_s11, %s449_s11, %s450_s12  }
  0x33   :  { %442 = dma.done.wait [#allocation3], 128  }
  0x34   :  { %443 = vsyncadd [#allocation3], 4294967168 }
  0x35   :  { %444 = dma.done.wait [#allocation6], 1408  }
  0x36   :  { %445 = vsyncadd [#allocation6], 4294965888  ;;  %v453_v0 = vmov 0.0|0.0   ;;  %vm454_vm0 = vmmov 0   ;;  %v455_v1 = vmov 0.0   ;;  %v67_v2 = vld [vmem:[#allocation5] sm:$0xff] }
  0x37   :  { %330 = vmatprep.subr.bf16.mxu0 %v453_v0  ;;  %308 = vmatprep.mubr.msk.f32.mxu0 %vm454_vm0, %v455_v1  ;;  %v68_v3 = vld [vmem:[#allocation5 + $0x8] sm:$0xff]  ;;  %v156_v5 = vld [vmem:[#allocation7] sm:$0xff]  ;;  %v157_v6 = vld [vmem:[#allocation7 + $0x8] sm:$0xff]  ;;  %vm81_vm1 = vcmask 1043456   ;;  %vm77_vm2 = vcmask 162816   ;;  %vm171_vm3 = vcmask 523264  }
  0x38   :  { %333 = vmatprep.subr.bf16.mxu1 %v453_v0  ;;  %327 = vmatprep.mubr.msk.f32.mxu1 %vm454_vm0, %v455_v1  ;;  %v331_v4 = vpack.c.bf16 %v68_v3, %v67_v2  ;;  %v334_v7 = vpack.c.bf16 %v157_v6, %v156_v5  ;;  %v158_v8 = vld [vmem:[#allocation7 + $0x10] sm:$0xff]  ;;  %v159_v9 = vld [vmem:[#allocation7 + $0x18] sm:$0xff]  ;;  %v66_v12 = vld [vmem:[#allocation2] sm:$0xff]  ;;  %s456_s20 = smov [#allocation8]  }
  0x39   :  { %v69_v10 = vld [vmem:[#allocation5 + $0x10] sm:$0xf]  ;;  %v337_v11 = vpack.c.bf16 %v159_v9, %v158_v8  ;;  %v160_v13 = vld [vmem:[#allocation7 + $0x20] sm:$0xff]  ;;  %v161_v14 = vld [vmem:[#allocation7 + $0x28] sm:$0xff]  ;;  %s272_s21 = sshll.u32 %s456_s20, 4  ;;  %s273_s21 = int_to_ptr.vmem [resolvable:$true] %s272_s21 }
  0x3a   :  { %332 = vmatpush3.bf16.msra.mxu0 %v331_v4  ;;  %335 = vmatpush3.bf16.msra.mxu1 %v334_v7  ;;  %v340_v15 = vpack.c.bf16 %v161_v14, %v160_v13  ;;  %v162_v16 = vld [vmem:[#allocation7 + $0x30] sm:$0xff]  ;;  %v163_v17 = vld [vmem:[#allocation7 + $0x38] sm:$0xff]  ;;  %v282_v19 = vld [vmem:[%s565_s2] ss:$0 sm:$0xff]  ;;  %p425_p11 = scmp.lt.s32.totalorder %s273_s21, %s273_s21 }
  0x3b   :  { %306 = vmatprep.subr.mxu0 %v455_v1  ;;  %336 = vmatprep.subr.bf16.mxu1 %v453_v0  ;;  %v343_v18 = vpack.c.bf16 %v163_v17, %v162_v16  ;;  %v285_v24 = vld [vmem:[%s567_s4] ss:$0 sm:$0xff]  ;;  %s420_s4 = scalar_lea.vmem %s273_s21, 128 }
  0x3c   :  { %v287_v28 = vld [vmem:[%s568_s5] ss:$0 sm:$0xff]  ;;  %p421_p10 = scmp.ne.s32.totalorder %s273_s21, %s420_s4  ;;  %p426_p12 = scmp.lt.s32.totalorder %s420_s4, %s420_s4 }
  0x3d   :  { %v288_v32 = vld [vmem:[%s569_s6] ss:$0 sm:$0xff] }
  0x3e   :  { %307 = vmatpush3.msk.msra.mxu0 %vm81_vm1, %v69_v10  ;;  %338 = vmatpush3.bf16.msra.mxu1 %v337_v11  ;;  %p427_p13 = por %p426_p12, %p425_p11 }
  0x3f   :  { %309 = vmatmul.mubr.msk.f32.vlgmr.msra.gmra.mrb[0].mxu0 %vm77_vm2, %v66_v12  ;;  %339 = vmatprep.subr.bf16.mxu1 %v453_v0 }
  0x40   :  { %p428_p0 = pnand %p427_p13, %p421_p10 }
  0x42   :  { %341 = vmatpush3.bf16.msra.mxu1 %v340_v15 }
  0x43   :  { %342 = vmatprep.subr.bf16.mxu1 %v453_v0 }
  0x46   :  { %344 = vmatpush3.bf16.msra.mxu1 %v343_v18 }
 0x112   :  { %v151_v20 = vpop.f32.mrb[0].mxu0 }
 0x113   :  { %v152_v21 = vadd.f32 %v282_v19, %v151_v20  ;;  %v310_v22 = vpop.f32.mrb[1].mxu0 }
 0x115   :  { %v155_v23 = vmax.f32 %v152_v21, 0.0 }
 0x117   :  { %328 = vmatmul.mubr.msk.f32.vlgmr.msra.gmra.mrb[0].mxu1 %vm171_vm3, %v155_v23 }
 0x1ea   :  { %v241_v25 = vpop.f32.mrb[0].mxu1 }
 0x1eb   :  { %v242_v26 = vadd.f32 %v285_v24, %v241_v25  ;;  %v329_v27 = vpop.f32.mrb[1].mxu1 }
 0x1ed   :  { %v245_v29 = vmax.f32 %v242_v26, 0.0 }
 0x1ef   :  { %v253_v30 = vmul.f32 %v287_v28, %v245_v29 }
 0x1f1   :  { %v254_v31 = vsel %vm171_vm3, %v253_v30, 0.0 }
 0x1f2   :  { %255 = vadd.xlane.f32.xlu0 %v254_v31 }
 0x27f   :  { %v256_v33 = vpop.xlane.xlu0 %255 }
 0x280   :  { %v264_v34 = vadd.f32 %v288_v32, %v256_v33 }
 0x282   :  { %265 = vst [vmem:[#allocation8] sm:$0xff] %v264_v34 }
 0x283   :  { %431 = shalt.err (!%p428_p0)
}
 0x284   :  { %s432_s23 = scalar_lea.hbm %s570_s7, 128 }
 0x285   :  { %p433_p1 = scmp.ne.s32.totalorder %s570_s7, %s432_s23  ;;  %p436_p2 = scmp.lt.u32.totalorder %s432_s23, %s570_s7 }
 0x287   :  { %p438_p3 = pnand %p436_p2, %p433_p1 }
 0x289   :  { %441 = shalt.err (!%p438_p3)
}
 0x28a   :  { %275 = dma.vmem_to_hbm [thread:$0]  %s273_s21, 128, %s570_s7, [#allocation4]  }
 0x28b   :  { %446 = dma.done.wait [#allocation4], 128  }
 0x28c   :  { %447 = vsyncadd [#allocation4], 4294967168 }
 0x28d   :  { %279 = vsyncpa [#allocation3], 1 }
 0x28e   :  { %280 = vsyncpa [#allocation6], 1 }
 0x28f   :  { %281 = vsyncpa [#allocation4], 1 }

</bundles_post_ra>
